<compile_context>
chip_gen: v6e
topology: v6e:2x2x1
jax: 0.10.0
libtpu: 0.0.40
codegen_flags: <defaults>
</compile_context>

<pallas_src>
import functools

import jax
import jax.numpy as jnp
from jax.experimental import pallas as pl
from jax.experimental.pallas import tpu as pltpu


def _round_up(x, m):
    return (x + m - 1) // m * m


def basic_block_kernel(x_ref, wb1_ref, b1_ref, wb2_ref, b2_ref, mask_ref,
                       out_ref, *, Wp, lane):
    # x_ref   : (1, Cin, lane)   flattened zero-padded image (one batch elem);
    #                            lane = round_up(Hp*Wp, 128), tail is zero.
    # wb*_ref : (Cout, 9*Cin)    BN-scale-folded conv weights, tap-major cols.
    # b*_ref  : (Cout, 1)        folded BN bias.
    # mask_ref: (1, lane)        1.0 at interior padded-flat positions else 0.
    # out_ref : (1, Cout, lane)  output, same flattened padded layout.
    x = x_ref[0]                      # (Cin, lane)
    mask = mask_ref[...]              # (1, lane)

    # Flat-index offsets of the 9 taps of a 3x3 kernel on the padded plane.
    offsets = [(dy - 1) * Wp + (dx - 1) for dy in range(3) for dx in range(3)]

    def conv(inp, wb_ref, b_ref):
        # Build the 9-tap slab (9*C, lane): row t*C+ci holds inp[ci] shifted
        # so that slab[t*C+ci, p] == inp[ci, p + offsets[t]].  Shifts ride
        # the XLU; interior lanes never read wrapped-around values because
        # |offset| <= Wp+1 and interior positions sit >= Wp+1 from each end.
        taps = [pltpu.roll(inp, (-off) % lane, 1) for off in offsets]
        slab = jnp.concatenate(taps, axis=0)                    # (9*C, lane)
        acc = jnp.dot(wb_ref[...], slab,
                      preferred_element_type=jnp.float32)       # (Cout, lane)
        return acc + b_ref[...]

    # conv1 + bn1 + relu; zero the halo so conv2 sees proper zero padding.
    h1 = jnp.maximum(conv(x, wb1_ref, b1_ref), 0.0) * mask

    # conv2 + bn2 + residual add + relu.  Border lanes hold junk; the
    # wrapper discards them when extracting the interior.
    out_ref[0] = jnp.maximum(conv(h1, wb2_ref, b2_ref) + x, 0.0)


def basic_block_forward(x_nchw, w1, s1, b1, w2, s2, b2):
    """x_nchw: (N, C, H, W) f32; w*: (3,3,Cin,Cout) HWIO; s*/b*: (C,) folded BN.

    Returns (N, C, H, W) f32.
    """
    N, C, H, W = x_nchw.shape
    Cout = w1.shape[-1]
    assert C == Cout, "fused kernel assumes stride=1 / downsample=None"
    Hp, Wp = H + 2, W + 2
    flat = Hp * Wp
    lane = _round_up(flat, 128)

    # Zero-pad spatially, flatten row-major, pad the flat axis to 128-multiple.
    xp = jnp.pad(x_nchw, ((0, 0), (0, 0), (1, 1), (1, 1)))
    xf = jnp.pad(xp.reshape(N, C, flat), ((0, 0), (0, 0), (0, lane - flat)))

    # Fold BN scale into conv weights; lay out as (Cout, 9*Cin), tap-major.
    def fold(w, s):
        ws = w * s.reshape(1, 1, 1, -1)                      # scale along Cout
        return jnp.transpose(ws, (3, 0, 1, 2)).reshape(w.shape[-1], -1)

    wb1, wb2 = fold(w1, s1), fold(w2, s2)
    bb1, bb2 = b1.reshape(Cout, 1), b2.reshape(Cout, 1)

    # Interior mask in the flattened padded layout (1.0 = real pixel).
    p = jnp.arange(lane)
    row, col = p // Wp, p % Wp
    mask = ((p < flat) & (row >= 1) & (row <= H) & (col >= 1) & (col <= W))
    mask = mask.astype(jnp.float32).reshape(1, lane)

    kernel = functools.partial(basic_block_kernel, Wp=Wp, lane=lane)
    out_flat = pl.pallas_call(
        kernel,
        out_shape=jax.ShapeDtypeStruct((N, Cout, lane), jnp.float32),
        grid_spec=pltpu.PrefetchScalarGridSpec(
            num_scalar_prefetch=0,
            grid=(N,),
            in_specs=[
                pl.BlockSpec((1, C, lane), lambda n: (n, 0, 0)),
                pl.BlockSpec((Cout, 9 * C), lambda n: (0, 0)),
                pl.BlockSpec((Cout, 1), lambda n: (0, 0)),
                pl.BlockSpec((Cout, 9 * Cout), lambda n: (0, 0)),
                pl.BlockSpec((Cout, 1), lambda n: (0, 0)),
                pl.BlockSpec((1, lane), lambda n: (0, 0)),
            ],
            out_specs=pl.BlockSpec((1, Cout, lane), lambda n: (n, 0, 0)),
        ),
        compiler_params=pltpu.CompilerParams(
            dimension_semantics=("parallel",)),   # shard batch over TCs on v7x
    )(xf, wb1, bb1, wb2, bb2, mask)

    # Extract interior pixels; result is already NCHW.
    out = out_flat[:, :, :flat].reshape(N, Cout, Hp, Wp)
    return out[:, :, 1:H + 1, 1:W + 1]


def reference_forward(x_nchw, w1, s1, b1, w2, s2, b2):
    """Pure-JAX reference (same semantics) for validation."""
    x = jnp.transpose(x_nchw, (0, 2, 3, 1))

    def conv(y, w):
        return jax.lax.conv_general_dilated(
            y, w, window_strides=(1, 1), padding=((1, 1), (1, 1)),
            dimension_numbers=("NHWC", "HWIO", "NHWC"))

    out = jnp.maximum(conv(x, w1) * s1 + b1, 0.0)
    out = conv(out, w2) * s2 + b2
    out = jnp.maximum(out + x, 0.0)
    return jnp.transpose(out, (0, 3, 1, 2))


if __name__ == "__main__":
    # batch=2, inplanes=planes=8, spatial=16x16 (stride=1, no downsample)
    N, C, H, W = 2, 8, 16, 16
    P = C  # planes == inplanes so downsample is None in the PyTorch module

    key = jax.random.PRNGKey(0)
    ks = jax.random.split(key, 12)

    x = jax.random.normal(ks[0], (N, C, H, W), jnp.float32)

    # conv weights (HWIO), deterministic synthetic init
    w1 = jax.random.normal(ks[1], (3, 3, C, P), jnp.float32) * 0.1
    w2 = jax.random.normal(ks[2], (3, 3, P, P), jnp.float32) * 0.1

    # BatchNorm params (inference mode), folded to per-channel scale/bias
    eps = 1e-5
    gamma1 = 1.0 + 0.1 * jax.random.normal(ks[3], (P,), jnp.float32)
    beta1 = 0.1 * jax.random.normal(ks[4], (P,), jnp.float32)
    rmean1 = 0.1 * jax.random.normal(ks[5], (P,), jnp.float32)
    rvar1 = jax.random.uniform(ks[6], (P,), jnp.float32, 0.5, 1.5)
    gamma2 = 1.0 + 0.1 * jax.random.normal(ks[7], (P,), jnp.float32)
    beta2 = 0.1 * jax.random.normal(ks[8], (P,), jnp.float32)
    rmean2 = 0.1 * jax.random.normal(ks[9], (P,), jnp.float32)
    rvar2 = jax.random.uniform(ks[10], (P,), jnp.float32, 0.5, 1.5)

    s1 = gamma1 / jnp.sqrt(rvar1 + eps)
    b1 = beta1 - rmean1 * s1
    s2 = gamma2 / jnp.sqrt(rvar2 + eps)
    b2 = beta2 - rmean2 * s2

    out = basic_block_forward(x, w1, s1, b1, w2, s2, b2)
    out = jax.block_until_ready(out)

    ref = jax.block_until_ready(reference_forward(x, w1, s1, b1, w2, s2, b2))
    assert out.shape == (N, P, H, W)
    assert jnp.allclose(out, ref, rtol=1e-4, atol=1e-4), "kernel/ref mismatch"

    print("KERNEL_OK")
</pallas_src>

<mosaic_0001>
module attributes {stable_mosaic.version = 11 : i64} {
  func.func @basic_block_kernel(%arg0: i32, %arg1: memref<1x8x384xf32, #tpu.memory_space<vmem>>, %arg2: memref<8x72xf32, #tpu.memory_space<vmem>>, %arg3: memref<8x1xf32, #tpu.memory_space<vmem>>, %arg4: memref<8x72xf32, #tpu.memory_space<vmem>>, %arg5: memref<8x1xf32, #tpu.memory_space<vmem>>, %arg6: memref<1x384xf32, #tpu.memory_space<vmem>>, %arg7: memref<1x8x384xf32, #tpu.memory_space<vmem>>) attributes {dimension_semantics = [#tpu.dimension_semantics<parallel>], iteration_bounds = array<i64: 2>, scalar_prefetch = 0 : i64, scratch_operands = 0 : i64, tpu.core_type = #tpu.core_type<tc>, window_params = [{transform_indices = @transform_0, window_bounds = array<i64: 1, 8, 384>}, {pipeline_mode = #tpu.pipeline_mode<synchronous>, transform_indices = @transform_1, window_bounds = array<i64: 8, 72>}, {pipeline_mode = #tpu.pipeline_mode<synchronous>, transform_indices = @transform_2, window_bounds = array<i64: 8, 1>}, {pipeline_mode = #tpu.pipeline_mode<synchronous>, transform_indices = @transform_3, window_bounds = array<i64: 8, 72>}, {pipeline_mode = #tpu.pipeline_mode<synchronous>, transform_indices = @transform_4, window_bounds = array<i64: 8, 1>}, {pipeline_mode = #tpu.pipeline_mode<synchronous>, transform_indices = @transform_5, window_bounds = array<i64: 1, 384>}, {transform_indices = @transform_6, window_bounds = array<i64: 1, 8, 384>}]} {
    %c0 = arith.constant 0 : index
    %c0_0 = arith.constant 0 : index
    %c0_1 = arith.constant 0 : index
    %0 = vector.load %arg1[%c0, %c0_0, %c0_1] : memref<1x8x384xf32, #tpu.memory_space<vmem>>, vector<1x8x384xf32>
    %1 = vector.shape_cast %0 : vector<1x8x384xf32> to vector<8x384xf32>
    %c0_2 = arith.constant 0 : index
    %c0_3 = arith.constant 0 : index
    %2 = vector.load %arg6[%c0_2, %c0_3] : memref<1x384xf32, #tpu.memory_space<vmem>>, vector<1x384xf32>
    %c19_i32 = arith.constant 19 : i32
    %3 = tpu.dynamic_rotate %1 by %c19_i32 dim 1 : vector<8x384xf32>, i32 -> vector<8x384xf32>
    %c18_i32 = arith.constant 18 : i32
    %4 = tpu.dynamic_rotate %1 by %c18_i32 dim 1 : vector<8x384xf32>, i32 -> vector<8x384xf32>
    %c17_i32 = arith.constant 17 : i32
    %5 = tpu.dynamic_rotate %1 by %c17_i32 dim 1 : vector<8x384xf32>, i32 -> vector<8x384xf32>
    %c1_i32 = arith.constant 1 : i32
    %6 = tpu.dynamic_rotate %1 by %c1_i32 dim 1 : vector<8x384xf32>, i32 -> vector<8x384xf32>
    %c0_i32 = arith.constant 0 : i32
    %7 = tpu.dynamic_rotate %1 by %c0_i32 dim 1 : vector<8x384xf32>, i32 -> vector<8x384xf32>
    %c383_i32 = arith.constant 383 : i32
    %8 = tpu.dynamic_rotate %1 by %c383_i32 dim 1 : vector<8x384xf32>, i32 -> vector<8x384xf32>
    %c367_i32 = arith.constant 367 : i32
    %9 = tpu.dynamic_rotate %1 by %c367_i32 dim 1 : vector<8x384xf32>, i32 -> vector<8x384xf32>
    %c366_i32 = arith.constant 366 : i32
    %10 = tpu.dynamic_rotate %1 by %c366_i32 dim 1 : vector<8x384xf32>, i32 -> vector<8x384xf32>
    %c365_i32 = arith.constant 365 : i32
    %11 = tpu.dynamic_rotate %1 by %c365_i32 dim 1 : vector<8x384xf32>, i32 -> vector<8x384xf32>
    %12 = tpu.concatenate %3, %4, %5, %6, %7, %8, %9, %10, %11 in 0 : vector<8x384xf32>, vector<8x384xf32>, vector<8x384xf32>, vector<8x384xf32>, vector<8x384xf32>, vector<8x384xf32>, vector<8x384xf32>, vector<8x384xf32>, vector<8x384xf32> -> vector<72x384xf32>
    %c0_4 = arith.constant 0 : index
    %c0_5 = arith.constant 0 : index
    %13 = vector.load %arg2[%c0_4, %c0_5] : memref<8x72xf32, #tpu.memory_space<vmem>>, vector<8x72xf32>
    %cst = arith.constant dense<0.000000e+00> : vector<8x384xf32>
    %14 = tpu.matmul %13, %12, %cst {dimension_numbers = #tpu.dot_dimension_numbers<[1], [0], [0], [1], [0, 0, 1, 1], [], []>} : vector<8x72xf32>, vector<72x384xf32>, vector<8x384xf32> -> vector<8x384xf32>
    %c0_6 = arith.constant 0 : index
    %c0_7 = arith.constant 0 : index
    %15 = vector.load %arg3[%c0_6, %c0_7] : memref<8x1xf32, #tpu.memory_space<vmem>>, vector<8x1xf32>
    %16 = vector.broadcast %15 : vector<8x1xf32> to vector<8x384xf32>
    %17 = arith.addf %14, %16 : vector<8x384xf32>
    %cst_8 = arith.constant 0.000000e+00 : f32
    %18 = vector.broadcast %cst_8 : f32 to vector<8x384xf32>
    %19 = arith.maximumf %17, %18 : vector<8x384xf32>
    %20 = vector.broadcast %2 : vector<1x384xf32> to vector<8x384xf32>
    %21 = arith.mulf %19, %20 : vector<8x384xf32>
    %c19_i32_9 = arith.constant 19 : i32
    %22 = tpu.dynamic_rotate %21 by %c19_i32_9 dim 1 : vector<8x384xf32>, i32 -> vector<8x384xf32>
    %c18_i32_10 = arith.constant 18 : i32
    %23 = tpu.dynamic_rotate %21 by %c18_i32_10 dim 1 : vector<8x384xf32>, i32 -> vector<8x384xf32>
    %c17_i32_11 = arith.constant 17 : i32
    %24 = tpu.dynamic_rotate %21 by %c17_i32_11 dim 1 : vector<8x384xf32>, i32 -> vector<8x384xf32>
    %c1_i32_12 = arith.constant 1 : i32
    %25 = tpu.dynamic_rotate %21 by %c1_i32_12 dim 1 : vector<8x384xf32>, i32 -> vector<8x384xf32>
    %c0_i32_13 = arith.constant 0 : i32
    %26 = tpu.dynamic_rotate %21 by %c0_i32_13 dim 1 : vector<8x384xf32>, i32 -> vector<8x384xf32>
    %c383_i32_14 = arith.constant 383 : i32
    %27 = tpu.dynamic_rotate %21 by %c383_i32_14 dim 1 : vector<8x384xf32>, i32 -> vector<8x384xf32>
    %c367_i32_15 = arith.constant 367 : i32
    %28 = tpu.dynamic_rotate %21 by %c367_i32_15 dim 1 : vector<8x384xf32>, i32 -> vector<8x384xf32>
    %c366_i32_16 = arith.constant 366 : i32
    %29 = tpu.dynamic_rotate %21 by %c366_i32_16 dim 1 : vector<8x384xf32>, i32 -> vector<8x384xf32>
    %c365_i32_17 = arith.constant 365 : i32
    %30 = tpu.dynamic_rotate %21 by %c365_i32_17 dim 1 : vector<8x384xf32>, i32 -> vector<8x384xf32>
    %31 = tpu.concatenate %22, %23, %24, %25, %26, %27, %28, %29, %30 in 0 : vector<8x384xf32>, vector<8x384xf32>, vector<8x384xf32>, vector<8x384xf32>, vector<8x384xf32>, vector<8x384xf32>, vector<8x384xf32>, vector<8x384xf32>, vector<8x384xf32> -> vector<72x384xf32>
    %c0_18 = arith.constant 0 : index
    %c0_19 = arith.constant 0 : index
    %32 = vector.load %arg4[%c0_18, %c0_19] : memref<8x72xf32, #tpu.memory_space<vmem>>, vector<8x72xf32>
    %cst_20 = arith.constant dense<0.000000e+00> : vector<8x384xf32>
    %33 = tpu.matmul %32, %31, %cst_20 {dimension_numbers = #tpu.dot_dimension_numbers<[1], [0], [0], [1], [0, 0, 1, 1], [], []>} : vector<8x72xf32>, vector<72x384xf32>, vector<8x384xf32> -> vector<8x384xf32>
    %c0_21 = arith.constant 0 : index
    %c0_22 = arith.constant 0 : index
    %34 = vector.load %arg5[%c0_21, %c0_22] : memref<8x1xf32, #tpu.memory_space<vmem>>, vector<8x1xf32>
    %35 = vector.broadcast %34 : vector<8x1xf32> to vector<8x384xf32>
    %36 = arith.addf %33, %35 : vector<8x384xf32>
    %37 = arith.addf %36, %1 : vector<8x384xf32>
    %cst_23 = arith.constant 0.000000e+00 : f32
    %38 = vector.broadcast %cst_23 : f32 to vector<8x384xf32>
    %39 = arith.maximumf %37, %38 : vector<8x384xf32>
    %c0_24 = arith.constant 0 : index
    %c0_25 = arith.constant 0 : index
    %c0_26 = arith.constant 0 : index
    %40 = vector.load %arg7[%c0_24, %c0_25, %c0_26] : memref<1x8x384xf32, #tpu.memory_space<vmem>>, vector<1x8x384xf32>
    %41 = vector.shape_cast %40 : vector<1x8x384xf32> to vector<8x384xf32>
    %42 = vector.shape_cast %39 : vector<8x384xf32> to vector<1x8x384xf32>
    tpu.vector_store %arg7[%c0_24, %c0_25, %c0_26], %42 {strides = array<i32>} : memref<1x8x384xf32, #tpu.memory_space<vmem>>, vector<1x8x384xf32>,
    return
  }
  func.func @transform_0(%arg0: i32) -> (i32, i32, i32) {
    %c0_i32 = arith.constant 0 : i32
    %c0_i32_0 = arith.constant 0 : i32
    %c0_i32_1 = arith.constant 0 : i32
    return %arg0, %c0_i32, %c0_i32_0 : i32, i32, i32
  }
  func.func @transform_1(%arg0: i32) -> (i32, i32) {
    %c0_i32 = arith.constant 0 : i32
    %c0_i32_0 = arith.constant 0 : i32
    %c0_i32_1 = arith.constant 0 : i32
    return %c0_i32, %c0_i32_0 : i32, i32
  }
  func.func @transform_2(%arg0: i32) -> (i32, i32) {
    %c0_i32 = arith.constant 0 : i32
    %c0_i32_0 = arith.constant 0 : i32
    %c0_i32_1 = arith.constant 0 : i32
    return %c0_i32, %c0_i32_0 : i32, i32
  }
  func.func @transform_3(%arg0: i32) -> (i32, i32) {
    %c0_i32 = arith.constant 0 : i32
    %c0_i32_0 = arith.constant 0 : i32
    %c0_i32_1 = arith.constant 0 : i32
    return %c0_i32, %c0_i32_0 : i32, i32
  }
  func.func @transform_4(%arg0: i32) -> (i32, i32) {
    %c0_i32 = arith.constant 0 : i32
    %c0_i32_0 = arith.constant 0 : i32
    %c0_i32_1 = arith.constant 0 : i32
    return %c0_i32, %c0_i32_0 : i32, i32
  }
  func.func @transform_5(%arg0: i32) -> (i32, i32) {
    %c0_i32 = arith.constant 0 : i32
    %c0_i32_0 = arith.constant 0 : i32
    %c0_i32_1 = arith.constant 0 : i32
    return %c0_i32, %c0_i32_0 : i32, i32
  }
  func.func @transform_6(%arg0: i32) -> (i32, i32, i32) {
    %c0_i32 = arith.constant 0 : i32
    %c0_i32_0 = arith.constant 0 : i32
    %c0_i32_1 = arith.constant 0 : i32
    return %arg0, %c0_i32, %c0_i32_0 : i32, i32, i32
  }
}

</mosaic_0001>

<bundles_post_ra>
// kernel: tpu_custom_call.1
= control target key start
LH: loop header
LB: loop body
LE: loop exit
PB: predicated region body
PF: predicated region fallthrough
CT: control target
= control target key end

     0   :  { %11 = vsyncpa [#allocation3], 0  ;;  %s1513_s0 = inlined_call_operand.hbm [shape: f32[2,8,384], index: 0, kind: input, shape index: {}]   ;;  %s1514_s1 = inlined_call_operand.vmem [shape: f32[8,72], index: 1, kind: input, shape index: {}]   ;;  %s1515_s2 = inlined_call_operand.vmem [shape: f32[8,1], index: 2, kind: input, shape index: {}]   ;;  %s1516_s3 = inlined_call_operand.vmem [shape: f32[8,72], index: 3, kind: input, shape index: {}]   ;;  %s1517_s4 = inlined_call_operand.vmem [shape: f32[8,1], index: 4, kind: input, shape index: {}]   ;;  %s1518_s5 = inlined_call_operand.vmem [shape: f32[1,384], index: 5, kind: input, shape index: {}]   ;;  %s1519_s6 = inlined_call_operand.hbm [shape: f32[2,8,384], index: 6, kind: output, shape index: {}]  }
   0x1   :  { %13 = vsyncpa [#allocation3 + $0x1], 0 }
   0x2   :  { %14 = vsyncpa [#allocation4], 0 }
   0x3   :  { %16 = vsyncpa [#allocation4 + $0x1], 0  ;;  %s1123_s21 = smov 0   ;;  %s1125_s22 = smov 0  }
   0x4   :  { %s1127_s23 = smov 0   ;;  %s1129_s24 = smov 0  }
   0x5 LB: > { %s1144_s25 = sadd.s32 4294967295, %s1073_s24   ;;  %s845_s26 = sadd.s32 4294967294, %s1073_s24   ;;  %s1073_s24 = sphi %s1129_s24, %s1535_s24   ;;  %s1069_s23 = sphi %s1127_s23, %s1534_s23   ;;  %s1065_s22 = sphi %s1125_s22, %s1533_s22   ;;  %s1061_s21 = sphi %s1123_s21, %s1532_s21  }
   0x6   : > { %s1148_s27 = sadd.s32 1, %s1073_s24   ;;  %s29_s28 = sadd.s32 1, %s1069_s23 }
   0x7   : > { %s26_s29 = ssub.s32 %s1073_s24, %s1148_s27  ;;  %p36_p0 = scmp.ne.s32.totalorder %s1069_s23, %s1065_s22 }
   0x8   : > { %p27_p1 = scmp.eq.s32.totalorder %s26_s29, 0  ;;  %p37_p2 = scmp.eq.s32.totalorder %s1073_s24, 0 }
   0x9   : > { %p42_p3 = scmp.ne.s32.totalorder %s1065_s22, %s1061_s21  ;;  %p43_p4 = scmp.eq.s32.totalorder %s1144_s25, 0 }
   0xa   : > { %s1160_s30 = scalar_select %p27_p1, %s1069_s23, %s29_s28  }
   0xb   : > { %p38_p5 = por %p37_p2, %p36_p0  ;;  %p1162_p6 = por %p43_p4, %p42_p3 }
   0xc   : > { %p171_p7 = scmp.eq.s32.totalorder %s1144_s25, 1  ;;  %p177_p8 = scmp.eq.s32.totalorder %s845_s26, 1 }
   0xd   : > { %s1522_s7 = scalar_select %p1162_p6, 1, 0 }
   0xe   : > { %p935_p10 = scmp.lt.s32.totalorder %s1073_s24, 2  ;;  %p1169_p11 = por %p171_p7, %p36_p0 }
   0xf   : > { %p1173_p12 = por %p177_p8, %p42_p3  ;;  %s212_s10 = sand.u32 1, %s1069_s23  }
  0x10   : > { %s1523_s8 = scalar_select %p1169_p11, 1, 0 }
  0x11   : > { %s1524_s9 = scalar_select %p1173_p12, 1, 0 }
  0x12   : > { %s920_s11 = smul.u32 384, %s1073_s24  ;;  %p1184_p13 = pnand %p935_p10, %p38_p5 }
  0x13   : > { %s919_s12 = smul.u32 24, %s212_s10  ;;  %s213_s19 = scalar_lea.sflag [#allocation3], %s212_s10 }
  0x14   : > { %s1182_s15 = scalar_lea.hbm %s1513_s0, %s920_s11  ;;  %p983_p3 = pneg %p1184_p13 }
  0x15   : > { %s216_s17 = scalar_lea.vmem [#allocation2], %s919_s12  ;;  %s981_s20 = scalar_lea.hbm %s1182_s15, 384 }
  0x16   : > { %s224_s18 = sshll.u32 %s216_s17, 4  ;;  %p982_p2 = scmp.ne.s32.totalorder %s1182_s15, %s981_s20  ;;  %s225_s18 = int_to_ptr.vmem [resolvable:$true] %s224_s18 }
  0x17   : > { %s986_s29 = scalar_lea.hbm %s1513_s0, 768  ;;  %p987_p5 = scmp.lt.s32.totalorder %s1182_s15, %s1513_s0 }
  0x18   : > { %p984_p4 = pnand %p983_p3, %p982_p2  ;;  %p988_p8 = scmp.lt.s32.totalorder %s986_s29, %s981_s20 }
  0x1a   : > { %p985_p7 = pneg %p984_p4  ;;  %p989_p10 = por %p988_p8, %p987_p5 }
  0x1c   : > { %p990_p9 = pnand %p989_p10, %p985_p7 }
  0x1e   : > { %993 = shalt.err (!%p990_p9)
}
  0x1f   : > { %s994_s12 = scalar_lea.vmem %s225_s18, 384  ;;  %s1075_s10 = smov [#allocation2]  }
  0x20   : > { %p995_p0 = scmp.ne.s32.totalorder %s225_s18, %s994_s12  ;;  %s999_s14 = sshll.u32 %s1075_s10, 4  ;;  %s1000_s14 = int_to_ptr.vmem [resolvable:$false] %s999_s14 }
  0x21   : > { %s1001_s17 = scalar_lea.vmem %s1000_s14, 768  ;;  %p1002_p2 = scmp.lt.s32.totalorder %s225_s18, %s1000_s14 }
  0x22   : > { %p997_p1 = pnand %p995_p0, %p983_p3  ;;  %p1003_p4 = scmp.lt.s32.totalorder %s1001_s17, %s994_s12 }
  0x24   : > { %p998_p12 = pneg %p997_p1  ;;  %p1004_p11 = por %p1003_p4, %p1002_p2 }
  0x26   : > { %p1005_p6 = pnand %p1004_p11, %p998_p12 }
  0x28   : > { %1008 = shalt.err (!%p1005_p6)
}
  0x29   : > { %930 = dma.hbm_to_vmem [thread:$0]  (!%p1184_p13), %s1182_s15, 384, %s225_s18, %s213_s19  }
  0x2a   : > { %p1526_p9 = scmp.lt.s32.totalorder %s1073_s24, 3  ;;  %p1527_p7 = scmp.ge.s32.totalorder %s1073_s24, 1 }
  0x2c   : > { %p230_p5 = pnand %p1527_p7, %p1526_p9 }
  0x2d   : > { %s1209_s20 = sand.u32 (!%p230_p5), 1, %s1065_s22   ;;  %p1528_p6 = scmp.ne.s32.totalorder (!%p230_p5), %s1522_s7, 0 }
  0x2e   : > { %233 = sbr.rel (%p230_p5) target bundleno = 793 (0x319), region = 44  ;;  %s236_s28 = scalar_lea.sflag (!%p230_p5), [#allocation3], %s1209_s20 }
  0x2f   : > { %s921_s26 = smul.u32 (!%p230_p5), 24, %s1209_s20 }
  0x31   : > { %s239_s29 = scalar_lea.vmem (!%p230_p5), [#allocation2], %s921_s26 }
  0x33   : > { %1052 = dma.done.wait (%p1528_p6), %s236_s28, 384  }
  0x34   : > { %1054 = vsyncadd (%p1528_p6), %s236_s28, 4294966912  ;;  %v1076_v0 = vmov 0.0   ;;  %v1221_v1 = vld [vmem:[%s239_s29 + $0x8] sm:$0xff]  ;;  %v1223_v2 = vld [vmem:[%s239_s29] sm:$0xff]  ;;  %s1077_s15 = smov 109   ;;  %s1078_s7 = smov 110   ;;  %v278_v6 = vlaneseq }
  0x35   : > { %877 = vmatprep.subr.mxu1 %v1076_v0  ;;  %429 = vmatprep.mubr.f32.mxu0 %v1076_v0  ;;  %v1229_v3 = vld [vmem:[%s239_s29 + $0x10] sm:$0xff]  ;;  %s1079_s16 = smov 111   ;;  %s1080_s18 = smov 127   ;;  %vm1083_vm0 = vmmov 0   ;;  %v1084_v4 = vmov 0   ;;  %v355_v5 = vld [vmem:[%s1515_s2] sm:$0xff] }
  0x36   : > { %346 = vrot.lane.b32.xlu0 %v1221_v1, %s1077_s15  ;;  %344 = vrot.lane.b32.xlu1 %v1223_v2, %s1077_s15  ;;  %s1081_s19 = smov 1   ;;  %s1082_s11 = smov 17   ;;  %v1281_v7 = vand.u32 127, %v278_v6  ;;  %v354_v53 = vld [vmem:[%s1514_s1] sm:$0xff]  ;;  %vm361_vm9 = vcmask 588800   ;;  %v511_v57 = vshrl.u32 %v278_v6, 7 }
  0x37   : > { %895 = vmatprep.mubr.msk.f32.mxu1 %vm1083_vm0, %v1076_v0  ;;  %980 = vset.pattern.permute.xlu0 %v1084_v4  ;;  %s1085_s13 = smov 18   ;;  %s1086_s12 = smov 19   ;;  %v271_v60 = vld [vmem:[%s1518_s5] sm:$0x7] }
  0x38   : > { %vm350_vm1 = vcmp.lt.s32.totalorder %v1281_v7, 109  ;;  %vm340_vm2 = vcmp.lt.s32.totalorder %v1281_v7, 110  ;;  %vm330_vm3 = vcmp.lt.s32.totalorder %v1281_v7, 111  ;;  %vm320_vm4 = vcmp.lt.s32.totalorder %v1281_v7, 127  ;;  %s761_s28 = scalar_lea.sflag [#allocation4], %s1209_s20  ;;  %p1529_p12 = scmp.ne.s32.totalorder %s1523_s8, 0 }
  0x39   : > { %vm310_vm5 = vcmp.lt.s32.totalorder %v1281_v7, 1  ;;  %vm300_vm6 = vcmp.lt.s32.totalorder %v1281_v7, 17  ;;  %vm290_vm7 = vcmp.lt.s32.totalorder %v1281_v7, 18  ;;  %vm280_vm8 = vcmp.lt.s32.totalorder %v1281_v7, 19 }
  0x3a   : > { %348 = vrot.lane.b32.xlu0 %v1229_v3, %s1077_s15  ;;  %336 = vrot.lane.b32.xlu1 %v1221_v1, %s1078_s7  ;;  %v520_v58 = vsub.s32 2, %v511_v57 }
  0x3c   : > { %v521_v63 = vrot.slane %v271_v60, %v520_v58 }
  0x3e   : > { %338 = vrot.lane.b32.xlu0 %v1229_v3, %s1078_s7  ;;  %334 = vrot.lane.b32.xlu1 %v1223_v2, %s1078_s7 }
  0x42   : > { %326 = vrot.lane.b32.xlu0 %v1221_v1, %s1079_s16  ;;  %328 = vrot.lane.b32.xlu1 %v1229_v3, %s1079_s16 }
  0x46   : > { %324 = vrot.lane.b32.xlu0 %v1223_v2, %s1079_s16  ;;  %316 = vrot.lane.b32.xlu1 %v1221_v1, %s1080_s18 }
  0x4a   : > { %318 = vrot.lane.b32.xlu0 %v1229_v3, %s1080_s18  ;;  %314 = vrot.lane.b32.xlu1 %v1223_v2, %s1080_s18 }
  0x4e   : > { %304 = vrot.lane.b32.xlu0 %v1223_v2, %s1081_s19  ;;  %306 = vrot.lane.b32.xlu1 %v1221_v1, %s1081_s19 }
  0x52   : > { %308 = vrot.lane.b32.xlu0 %v1229_v3, %s1081_s19  ;;  %294 = vrot.lane.b32.xlu1 %v1223_v2, %s1082_s11 }
  0x56   : > { %296 = vrot.lane.b32.xlu0 %v1221_v1, %s1082_s11  ;;  %298 = vrot.lane.b32.xlu1 %v1229_v3, %s1082_s11 }
  0x5a   : > { %284 = vrot.lane.b32.xlu0 %v1223_v2, %s1085_s13  ;;  %286 = vrot.lane.b32.xlu1 %v1221_v1, %s1085_s13 }
  0x5e   : > { %288 = vrot.lane.b32.xlu0 %v1229_v3, %s1085_s13  ;;  %272 = vrot.lane.b32.xlu1 %v1223_v2, %s1086_s12 }
  0x62   : > { %274 = vrot.lane.b32.xlu0 %v1221_v1, %s1086_s12  ;;  %276 = vrot.lane.b32.xlu1 %v1229_v3, %s1086_s12 }
  0x66   : > { %358 = vperm.xlu0 %980, %v355_v5  }
  0xa8   : > { %v347_v8 = vpop.permute.xlu0 %346  ;;  %v345_v9 = vpop.permute.xlu1 %344 }
  0xa9   : > { %v352_v14 = vsel %vm350_vm1, %v345_v9, %v347_v8 }
  0xac   : > { %v349_v10 = vpop.permute.xlu0 %348  ;;  %v337_v11 = vpop.permute.xlu1 %336 }
  0xad   : > { %v351_v12 = vsel %vm350_vm1, %v347_v8, %v349_v10  ;;  %v353_v13 = vsel %vm350_vm1, %v349_v10, %v345_v9 }
  0xae   : > { %379 = vmatprep.subr.mxu0 %v351_v12  ;;  %878 = vmatpush3.msra.mxu1 %v353_v13 }
  0xaf   : > { %380 = vmatpush1.msra.mxu0 %v352_v14  ;;  %879 = vmatprep.subr.mxu1 %v1076_v0 }
  0xb0   : > { %v339_v15 = vpop.permute.xlu0 %338  ;;  %v335_v16 = vpop.permute.xlu1 %334 }
  0xb1   : > { %v341_v17 = vsel %vm340_vm2, %v337_v11, %v339_v15  ;;  %v343_v18 = vsel %vm340_vm2, %v339_v15, %v335_v16  ;;  %v342_v19 = vsel %vm340_vm2, %v335_v16, %v337_v11  ;;  %v512_v11 = vsub.s32 0, %v511_v57 }
  0xb2   : > { %381 = vmatprep.subr.mxu0 %v341_v17  ;;  %880 = vmatpush3.msra.mxu1 %v343_v18  ;;  %v516_v16 = vsub.s32 1, %v511_v57 }
  0xb3   : > { %382 = vmatpush1.msra.mxu0 %v342_v19  ;;  %881 = vmatprep.subr.mxu1 %v1076_v0  ;;  %v513_v12 = vrot.slane %v271_v60, %v512_v11 }
  0xb4   : > { %v327_v20 = vpop.permute.xlu0 %326  ;;  %v329_v21 = vpop.permute.xlu1 %328  ;;  %v517_v18 = vrot.slane %v271_v60, %v516_v16 }
  0xb5   : > { %v331_v22 = vsel %vm330_vm3, %v327_v20, %v329_v21 }
  0xb6   : > { %383 = vmatprep.subr.mxu0 %v331_v22 }
  0xb8   : > { %v325_v23 = vpop.permute.xlu0 %324  ;;  %v317_v24 = vpop.permute.xlu1 %316 }
  0xb9   : > { %v332_v25 = vsel %vm330_vm3, %v325_v23, %v327_v20  ;;  %v333_v26 = vsel %vm330_vm3, %v329_v21, %v325_v23  ;;  %v601_v20 = vld [vmem:[%s1517_s4] sm:$0xff] }
  0xba   : > { %384 = vmatpush1.msra.mxu0 %v332_v25  ;;  %882 = vmatpush3.msra.mxu1 %v333_v26 }
  0xbb   : > { %883 = vmatprep.subr.mxu1 %v1076_v0 }
  0xbc   : > { %v319_v27 = vpop.permute.xlu0 %318  ;;  %v315_v28 = vpop.permute.xlu1 %314 }
  0xbd   : > { %v321_v29 = vsel %vm320_vm4, %v317_v24, %v319_v27  ;;  %v323_v30 = vsel %vm320_vm4, %v319_v27, %v315_v28  ;;  %v322_v31 = vsel %vm320_vm4, %v315_v28, %v317_v24 }
  0xbe   : > { %385 = vmatprep.subr.mxu0 %v321_v29  ;;  %884 = vmatpush3.msra.mxu1 %v323_v30 }
  0xbf   : > { %386 = vmatpush1.msra.mxu0 %v322_v31  ;;  %885 = vmatprep.subr.mxu1 %v1076_v0 }
  0xc0   : > { %v305_v32 = vpop.permute.xlu0 %304  ;;  %387 = vmatprep.subr.mxu0 %v1221_v1  ;;  %v307_v33 = vpop.permute.xlu1 %306  ;;  %886 = vmatpush3.msra.mxu1 %v1229_v3 }
  0xc1   : > { %388 = vmatpush1.msra.mxu0 %v1223_v2  ;;  %v312_v34 = vsel %vm310_vm5, %v305_v32, %v307_v33  ;;  %887 = vmatprep.subr.mxu1 %v1076_v0 }
  0xc2   : > { %389 = vmatprep.subr.mxu0 %v312_v34 }
  0xc4   : > { %v309_v35 = vpop.permute.xlu0 %308  ;;  %v295_v36 = vpop.permute.xlu1 %294 }
  0xc5   : > { %v313_v37 = vsel %vm310_vm5, %v309_v35, %v305_v32  ;;  %v311_v38 = vsel %vm310_vm5, %v307_v33, %v309_v35 }
  0xc6   : > { %390 = vmatpush1.msra.mxu0 %v313_v37  ;;  %888 = vmatpush3.msra.mxu1 %v311_v38 }
  0xc7   : > { %889 = vmatprep.subr.mxu1 %v1076_v0 }
  0xc8   : > { %v297_v39 = vpop.permute.xlu0 %296  ;;  %v299_v40 = vpop.permute.xlu1 %298 }
  0xc9   : > { %v302_v41 = vsel %vm300_vm6, %v295_v36, %v297_v39  ;;  %v301_v42 = vsel %vm300_vm6, %v297_v39, %v299_v40  ;;  %v303_v43 = vsel %vm300_vm6, %v299_v40, %v295_v36 }
  0xca   : > { %391 = vmatprep.subr.mxu0 %v302_v41  ;;  %890 = vmatpush3.msra.mxu1 %v301_v42 }
  0xcb   : > { %392 = vmatpush1.msra.mxu0 %v303_v43  ;;  %891 = vmatprep.subr.mxu1 %v1076_v0 }
  0xcc   : > { %v285_v44 = vpop.permute.xlu0 %284  ;;  %v287_v45 = vpop.permute.xlu1 %286 }
  0xcd   : > { %v292_v46 = vsel %vm290_vm7, %v285_v44, %v287_v45 }
  0xce   : > { %393 = vmatprep.subr.mxu0 %v292_v46 }
  0xd0   : > { %v289_v47 = vpop.permute.xlu0 %288  ;;  %v273_v48 = vpop.permute.xlu1 %272 }
  0xd1   : > { %v293_v49 = vsel %vm290_vm7, %v289_v47, %v285_v44  ;;  %v291_v50 = vsel %vm290_vm7, %v287_v45, %v289_v47 }
  0xd2   : > { %394 = vmatpush1.msra.mxu0 %v293_v49  ;;  %892 = vmatpush3.msra.mxu1 %v291_v50 }
  0xd3   : > { %893 = vmatprep.subr.mxu1 %v1076_v0 }
  0xd4   : > { %v275_v51 = vpop.permute.xlu0 %274  ;;  %v277_v52 = vpop.permute.xlu1 %276 }
  0xd5   : > { %v282_v54 = vsel %vm280_vm8, %v273_v48, %v275_v51  ;;  %v281_v55 = vsel %vm280_vm8, %v275_v51, %v277_v52  ;;  %v283_v56 = vsel %vm280_vm8, %v277_v52, %v273_v48 }
  0xd6   : > { %395 = vmatprep.subr.mxu0 %v282_v54  ;;  %894 = vmatpush3.msra.mxu1 %v281_v55 }
  0xd7   : > { %396 = vmatpush1.msra.mxu0 %v283_v56  ;;  %896 = vmatmul.mubr.msk.f32.vlgmr.msra.gmra.mxu1 %vm361_vm9, %v354_v53 }
  0xd8   : > { %850 = vmatmul.mubr.msk.f32.vlgmr.msra.gmra.mxu0 %vm361_vm9, %v354_v53  ;;  %898 = vmatprep.subr.mxu1 %v1076_v0 }
  0xd9   : > { %674 = vmatprep.mubr.f32.mxu0 %v1076_v0  ;;  %916 = vmatprep.mubr.msk.f32.mxu1 %vm1083_vm0, %v1076_v0 }
  0xe1   : > { %v359_v59 = vpop.permute.xlu0 %358 }
 0x197   : > { %v502_v61 = vpop.f32.mrf.mxu1 }
 0x198   : > { %v503_v62 = vadd.f32 %v502_v61, %v359_v59  ;;  %v431_v9 = vpop.f32.mrf.mxu0 }
 0x199   : > { %v897_v4 = vpop.f32.mrf.mxu1  ;;  %v432_v10 = vadd.f32 %v431_v9, %v359_v59  ;;  %v600_v9 = vld [vmem:[%s1516_s3] sm:$0xff] }
 0x19a   : > { %v508_v5 = vmax.f32 %v503_v62, 0.0  ;;  %v433_v14 = vpop.f32.mrf.mxu0 }
 0x19b   : > { %v506_v6 = vmax.f32 %v432_v10, 0.0  ;;  %v434_v15 = vadd.f32 %v433_v14, %v359_v59 }
 0x19c   : > { %v527_v8 = vmul.f32 %v521_v63, %v508_v5 }
 0x19d   : > { %v1369_v13 = vmul.f32 %v513_v12, %v506_v6  ;;  %v507_v17 = vmax.f32 %v434_v15, 0.0 }
 0x19e   : > { %586 = vrot.lane.b32.xlu0 %v527_v8, %s1078_s7  ;;  %595 = vrot.lane.b32.xlu1 %v527_v8, %s1077_s15 }
 0x19f   : > { %v1383_v19 = vmul.f32 %v517_v18, %v507_v17 }
 0x1a2   : > { %568 = vrot.lane.b32.xlu0 %v527_v8, %s1080_s18  ;;  %577 = vrot.lane.b32.xlu1 %v527_v8, %s1079_s16 }
 0x1a6   : > { %559 = vrot.lane.b32.xlu0 %v527_v8, %s1081_s19  ;;  %550 = vrot.lane.b32.xlu1 %v527_v8, %s1082_s11 }
 0x1aa   : > { %591 = vrot.lane.b32.xlu0 %v1369_v13, %s1077_s15  ;;  %582 = vrot.lane.b32.xlu1 %v1369_v13, %s1078_s7 }
 0x1ae   : > { %573 = vrot.lane.b32.xlu0 %v1369_v13, %s1079_s16  ;;  %564 = vrot.lane.b32.xlu1 %v1369_v13, %s1080_s18 }
 0x1b2   : > { %555 = vrot.lane.b32.xlu0 %v1369_v13, %s1081_s19  ;;  %546 = vrot.lane.b32.xlu1 %v1369_v13, %s1082_s11 }
 0x1b6   : > { %537 = vrot.lane.b32.xlu0 %v1369_v13, %s1085_s13  ;;  %593 = vrot.lane.b32.xlu1 %v1383_v19, %s1077_s15 }
 0x1ba   : > { %575 = vrot.lane.b32.xlu0 %v1383_v19, %s1079_s16  ;;  %584 = vrot.lane.b32.xlu1 %v1383_v19, %s1078_s7 }
 0x1be   : > { %541 = vrot.lane.b32.xlu0 %v527_v8, %s1085_s13  ;;  %528 = vrot.lane.b32.xlu1 %v1369_v13, %s1086_s12 }
 0x1c2   : > { %548 = vrot.lane.b32.xlu0 %v1383_v19, %s1082_s11  ;;  %566 = vrot.lane.b32.xlu1 %v1383_v19, %s1080_s18  ;;  %s267_s11 = scalar_lea.vmem [#allocation5], %s921_s26 }
 0x1c6   : > { %530 = vrot.lane.b32.xlu0 %v1383_v19, %s1086_s12  ;;  %557 = vrot.lane.b32.xlu1 %v1383_v19, %s1081_s19  ;;  %s922_s19 = smul.u32 384, %s1144_s25  ;;  %s1087_s25 = smov [#allocation5]  }
 0x1c7   : > { %s1013_s26 = sshll.u32 %s1087_s25, 4  ;;  %s1014_s26 = int_to_ptr.vmem [resolvable:$false] %s1013_s26 }
 0x1c8   : > { %s773_s17 = scalar_lea.hbm %s1519_s6, %s922_s19  ;;  %s1015_s10 = scalar_lea.vmem %s1014_s26, 768 }
 0x1ca   : > { %604 = vperm.xlu0 %980, %v601_v20   ;;  %539 = vrot.lane.b32.xlu1 %v1383_v19, %s1085_s13  ;;  %s775_s13 = sshll.u32 %s267_s11, 4  ;;  %s776_s13 = int_to_ptr.vmem [resolvable:$true] %s775_s13 }
 0x1cb   : > { %s1009_s29 = scalar_lea.vmem %s776_s13, 384  ;;  %p1016_p1 = scmp.lt.s32.totalorder %s776_s13, %s1014_s26 }
 0x1cc   : > { %p1010_p11 = scmp.ne.s32.totalorder %s776_s13, %s1009_s29  ;;  %p1017_p3 = scmp.lt.s32.totalorder %s1015_s10, %s1009_s29 }
 0x1ce   : > { %532 = vrot.lane.b32.xlu1 %v527_v8, %s1086_s12  ;;  %p1011_p13 = pnand %p1010_p11, %p1529_p12  ;;  %p1018_p8 = por %p1017_p3, %p1016_p1 }
 0x1d0   : > { %p1012_p0 = pneg %p1011_p13 }
 0x1d2   : > { %p1019_p10 = pnand %p1018_p8, %p1012_p0 }
 0x210   : > { %v587_v21 = vpop.permute.xlu0 %586  ;;  %v596_v22 = vpop.permute.xlu1 %595 }
 0x214   : > { %v569_v23 = vpop.permute.xlu0 %568  ;;  %v578_v24 = vpop.permute.xlu1 %577 }
 0x218   : > { %v560_v25 = vpop.permute.xlu0 %559  ;;  %v551_v26 = vpop.permute.xlu1 %550 }
 0x21c   : > { %v592_v27 = vpop.permute.xlu0 %591  ;;  %v583_v28 = vpop.permute.xlu1 %582 }
 0x21d   : > { %v599_v29 = vsel %vm350_vm1, %v596_v22, %v592_v27  ;;  %v590_v30 = vsel %vm340_vm2, %v587_v21, %v583_v28 }
 0x21e   : > { %899 = vmatpush3.msra.mxu1 %v599_v29 }
 0x21f   : > { %900 = vmatprep.subr.mxu1 %v1076_v0 }
 0x220   : > { %v574_v31 = vpop.permute.xlu0 %573  ;;  %901 = vmatpush3.msra.mxu1 %v590_v30  ;;  %v565_v32 = vpop.permute.xlu1 %564 }
 0x221   : > { %v581_v33 = vsel %vm330_vm3, %v578_v24, %v574_v31  ;;  %902 = vmatprep.subr.mxu1 %v1076_v0  ;;  %v572_v34 = vsel %vm320_vm4, %v569_v23, %v565_v32 }
 0x222   : > { %903 = vmatpush3.msra.mxu1 %v581_v33 }
 0x223   : > { %904 = vmatprep.subr.mxu1 %v1076_v0 }
 0x224   : > { %v556_v35 = vpop.permute.xlu0 %555  ;;  %905 = vmatpush3.msra.mxu1 %v572_v34  ;;  %v547_v36 = vpop.permute.xlu1 %546 }
 0x225   : > { %906 = vmatprep.subr.mxu1 %v1076_v0  ;;  %v563_v56 = vsel %vm310_vm5, %v560_v25, %v556_v35  ;;  %v554_v59 = vsel %vm300_vm6, %v551_v26, %v547_v36 }
 0x226   : > { %907 = vmatpush3.msra.mxu1 %v527_v8 }
 0x227   : > { %908 = vmatprep.subr.mxu1 %v1076_v0 }
 0x228   : > { %v538_v37 = vpop.permute.xlu0 %537  ;;  %v594_v38 = vpop.permute.xlu1 %593 }
 0x229   : > { %v598_v39 = vsel %vm350_vm1, %v592_v27, %v594_v38  ;;  %v597_v40 = vsel %vm350_vm1, %v594_v38, %v596_v22 }
 0x22a   : > { %624 = vmatprep.subr.mxu0 %v597_v40 }
 0x22b   : > { %625 = vmatpush1.msra.mxu0 %v598_v39 }
 0x22c   : > { %v576_v41 = vpop.permute.xlu0 %575  ;;  %v585_v42 = vpop.permute.xlu1 %584 }
 0x22d   : > { %v589_v43 = vsel %vm340_vm2, %v583_v28, %v585_v42  ;;  %v588_v44 = vsel %vm340_vm2, %v585_v42, %v587_v21  ;;  %v579_v45 = vsel %vm330_vm3, %v576_v41, %v578_v24  ;;  %v580_v46 = vsel %vm330_vm3, %v574_v31, %v576_v41 }
 0x22e   : > { %626 = vmatprep.subr.mxu0 %v588_v44 }
 0x22f   : > { %627 = vmatpush1.msra.mxu0 %v589_v43 }
 0x230   : > { %v542_v47 = vpop.permute.xlu0 %541  ;;  %628 = vmatprep.subr.mxu0 %v579_v45  ;;  %v529_v48 = vpop.permute.xlu1 %528 }
 0x231   : > { %629 = vmatpush1.msra.mxu0 %v580_v46  ;;  %v545_v4 = vsel %vm290_vm7, %v542_v47, %v538_v37 }
 0x234   : > { %v567_v49 = vpop.permute.xlu1 %566  ;;  %v549_v52 = vpop.permute.xlu0 %548 }
 0x235   : > { %v571_v50 = vsel %vm320_vm4, %v565_v32, %v567_v49  ;;  %v570_v51 = vsel %vm320_vm4, %v567_v49, %v569_v23  ;;  %v552_v57 = vsel %vm300_vm6, %v549_v52, %v551_v26  ;;  %v553_v58 = vsel %vm300_vm6, %v547_v36, %v549_v52 }
 0x236   : > { %630 = vmatprep.subr.mxu0 %v570_v51 }
 0x237   : > { %631 = vmatpush1.msra.mxu0 %v571_v50 }
 0x238   : > { %632 = vmatprep.subr.mxu0 %v1383_v19  ;;  %v558_v53 = vpop.permute.xlu1 %557  ;;  %v531_v60 = vpop.permute.xlu0 %530 }
 0x239   : > { %v561_v54 = vsel %vm310_vm5, %v558_v53, %v560_v25  ;;  %633 = vmatpush1.msra.mxu0 %v1369_v13  ;;  %v562_v55 = vsel %vm310_vm5, %v556_v35, %v558_v53  ;;  %v535_v5 = vsel %vm280_vm8, %v529_v48, %v531_v60 }
 0x23a   : > { %634 = vmatprep.subr.mxu0 %v562_v55  ;;  %909 = vmatpush3.msra.mxu1 %v561_v54 }
 0x23b   : > { %635 = vmatpush1.msra.mxu0 %v563_v56  ;;  %910 = vmatprep.subr.mxu1 %v1076_v0 }
 0x23c   : > { %636 = vmatprep.subr.mxu0 %v553_v58  ;;  %911 = vmatpush3.msra.mxu1 %v552_v57  ;;  %v540_v61 = vpop.permute.xlu1 %539 }
 0x23d   : > { %v543_v62 = vsel %vm290_vm7, %v540_v61, %v542_v47  ;;  %637 = vmatpush1.msra.mxu0 %v554_v59  ;;  %912 = vmatprep.subr.mxu1 %v1076_v0  ;;  %v544_v63 = vsel %vm290_vm7, %v538_v37, %v540_v61 }
 0x23e   : > { %638 = vmatprep.subr.mxu0 %v544_v63  ;;  %913 = vmatpush3.msra.mxu1 %v543_v62 }
 0x23f   : > { %639 = vmatpush1.msra.mxu0 %v545_v4  ;;  %914 = vmatprep.subr.mxu1 %v1076_v0 }
 0x240   : > { %640 = vmatprep.subr.mxu0 %v535_v5  ;;  %v533_v8 = vpop.permute.xlu1 %532 }
 0x241   : > { %v534_v10 = vsel %vm280_vm8, %v531_v60, %v533_v8  ;;  %v536_v11 = vsel %vm280_vm8, %v533_v8, %v529_v48 }
 0x242   : > { %641 = vmatpush1.msra.mxu0 %v536_v11  ;;  %915 = vmatpush3.msra.mxu1 %v534_v10 }
 0x243   : > { %852 = vmatmul.mubr.msk.f32.vlgmr.msra.gmra.mxu0 %vm361_vm9, %v600_v9  ;;  %917 = vmatmul.mubr.msk.f32.vlgmr.msra.gmra.mxu1 %vm361_vm9, %v600_v9 }
 0x245   : > { %v605_v0 = vpop.permute.xlu0 %604 }
 0x303   : > { %v676_v6 = vpop.f32.mrf.mxu0  ;;  %v747_v12 = vpop.f32.mrf.mxu1 }
 0x304   : > { %v677_v13 = vadd.f32 %v676_v6, %v605_v0  ;;  %v748_v14 = vadd.f32 %v747_v12, %v605_v0 }
 0x305   : > { %v678_v15 = vpop.f32.mrf.mxu0  ;;  %v918_v16 = vpop.f32.mrf.mxu1 }
 0x306   : > { %v751_v17 = vadd.f32 %v677_v13, %v1223_v2  ;;  %v753_v7 = vadd.f32 %v748_v14, %v1229_v3  ;;  %v679_v18 = vadd.f32 %v678_v15, %v605_v0 }
 0x308   : > { %v754_v19 = vmax.f32 %v751_v17, 0.0  ;;  %v756_v20 = vmax.f32 %v753_v7, 0.0  ;;  %v752_v21 = vadd.f32 %v679_v18, %v1221_v1 }
 0x30a   : > { %757 = vst [vmem:[%s267_s11] sm:$0xff] %v754_v19  ;;  %759 = vst [vmem:[%s267_s11 + $0x10] sm:$0xff] %v756_v20  ;;  %v755_v22 = vmax.f32 %v752_v21, 0.0 }
 0x30c   : > { %758 = vst [vmem:[%s267_s11 + $0x8] sm:$0xff] %v755_v22 }
 0x30d   : > { %1022 = shalt.err (!%p1019_p10)
}
 0x30e   : > { %s1023_s15 = scalar_lea.hbm %s773_s17, 384  ;;  %s1027_s7 = scalar_lea.hbm %s1519_s6, 768 }
 0x30f   : > { %p1024_p2 = scmp.ne.s32.totalorder %s773_s17, %s1023_s15  ;;  %p1028_p7 = scmp.lt.s32.totalorder %s773_s17, %s1519_s6 }
 0x310   : > { %p1029_p5 = scmp.lt.s32.totalorder %s1027_s7, %s1023_s15 }
 0x311   : > { %p1025_p4 = pnand %p1024_p2, %p1529_p12 }
 0x312   : > { %p1030_p6 = por %p1029_p5, %p1028_p7 }
 0x313   : > { %p1026_p9 = pneg %p1025_p4 }
 0x315   : > { %p1031_p11 = pnand %p1030_p6, %p1026_p9 }
 0x317   : > { %1034 = shalt.err (!%p1031_p11)
}
 0x318   : > { %925 = dma.vmem_to_hbm [thread:$0]  (%p1529_p12), %s776_s13, 384, %s773_s17, %s761_s28  }
 0x319 PF: > { %s787_s11 = sand.u32 1, %s1061_s21   ;;  %p1530_p13 = scmp.ne.s32.totalorder %s1524_s9, 0 }
 0x31a   : > { %p1531_p0 = scmp.ge.s32.totalorder %s1073_s24, 2  ;;  %s788_s12 = scalar_lea.sflag [#allocation4], %s787_s11 }
 0x31c   : > { %p932_p1 = pnand %p1531_p0, %p1530_p13 }
 0x31e   : > { %p933_p3 = pneg %p932_p1 }
 0x320   : > { %1056 = dma.done.wait (%p933_p3), %s788_s12, 384  }
 0x321   : > { %1058 = vsyncadd (%p933_p3), %s788_s12, 4294966912  ;;  %p19_p8 = scmp.ge.s32.totalorder %s1148_s27, 4   ;;  %s1532_s21 = smov %s1065_s22 }
 0x322   : > { %s1533_s22 = smov %s1069_s23  ;;  %s1534_s23 = smov %s1160_s30 }
 0x323   : > { %s1535_s24 = smov %s1148_s27  ;;  %21 = sbr.rel (!%p19_p8) target bundleno = 5 (0x5), region = 89 }
 0x328   :  { %793 = vsyncpa [#allocation3], 1 }
 0x329   :  { %795 = vsyncpa [#allocation3 + $0x1], 1 }
 0x32a   :  { %796 = vsyncpa [#allocation4], 1 }
 0x32b   :  { %798 = vsyncpa [#allocation4 + $0x1], 1 }

</bundles_post_ra>
